<compile_context>
chip_gen: v5e
topology: v5e:2x2
jax: 0.10.0
libtpu: 0.0.40
codegen_flags: <defaults>
</compile_context>

<pallas_src>
import jax
import jax.numpy as jnp
from jax.experimental import pallas as pl
from jax.experimental.pallas import tpu as pltpu

HIDDEN = 128
BN_EPS = 1e-5


def _batchnorm_train(x, gamma, beta):
    """Training-mode BN, single-pass stats, fused scale/shift.

    x: (B, F) f32; gamma/beta: (1, F) f32.
    """
    inv_n = 1.0 / x.shape[0]
    s = jnp.sum(x, axis=0, keepdims=True)         # one sublane (XLU) reduction
    sq = jnp.sum(x * x, axis=0, keepdims=True)    # second sublane reduction
    mean = s * inv_n
    var = jnp.maximum(sq * inv_n - mean * mean, 0.0)   # guard tiny negative
    scale = gamma * jax.lax.rsqrt(var + BN_EPS)        # rsqrt -> EUP slot
    shift = beta - mean * scale
    return x * scale + shift                           # 1 mul + 1 add / element


def residual_net_kernel(
    x_ref,                      # (B, Fp)   bf16 (feature dim padded to 128)
    w1_ref, b1_ref,             # fc1: Fp -> 128   (w bf16, b f32)
    rw1_ref, g1_ref, be1_ref,   # res_block fc1 (bias dropped) + bn1
    rw2_ref, g2_ref, be2_ref,   # res_block fc2 (bias dropped) + bn2
    wo_ref, bo_ref,             # fc2: 128 -> 1 as (1,128) row + (1,1) bias, f32
    o_ref,                      # (B, 1) f32
):
    # fc1 + ReLU  (bf16 MXU inputs, f32 accumulate)
    h = jnp.dot(x_ref[...], w1_ref[...],
                preferred_element_type=jnp.float32) + b1_ref[...]
    h = jnp.maximum(h, 0.0)

    # ResidualBlock: fc1 (bias cancelled by BN) -> bn1 -> relu
    t = jnp.dot(h.astype(jnp.bfloat16), rw1_ref[...],
                preferred_element_type=jnp.float32)
    t = _batchnorm_train(t, g1_ref[...], be1_ref[...])
    t = jnp.maximum(t, 0.0)

    # ResidualBlock: fc2 (bias cancelled by BN) -> bn2 -> +residual -> relu
    u = jnp.dot(t.astype(jnp.bfloat16), rw2_ref[...],
                preferred_element_type=jnp.float32)
    u = _batchnorm_train(u, g2_ref[...], be2_ref[...])
    u = jnp.maximum(u + h, 0.0)

    # final fc2: 128 -> 1 as a VPU multiply + lane reduction (avoids an N=1
    # MXU pass and the padded (128,1) weight tile); kept in f32.
    o_ref[...] = jnp.sum(u * wo_ref[...], axis=-1, keepdims=True) + bo_ref[...]


def residual_net(x, params):
    """x: (B, input_shape) float32. Returns (B, 1) float32."""
    B, F = x.shape
    Fp = ((F + 127) // 128) * 128   # pad feature dim to the 128-lane width

    # Wrapper-side layout/dtype prep: bf16 MXU operands, zero-padded K dim.
    x_p = jnp.zeros((B, Fp), jnp.bfloat16).at[:, :F].set(x.astype(jnp.bfloat16))
    w1_p = jnp.zeros((Fp, HIDDEN), jnp.bfloat16).at[:F, :].set(
        params["w1"].astype(jnp.bfloat16))

    args = (
        x_p,
        w1_p, params["b1"],
        params["rw1"].astype(jnp.bfloat16), params["g1"], params["be1"],
        params["rw2"].astype(jnp.bfloat16), params["g2"], params["be2"],
        params["wo"].reshape(1, HIDDEN), params["bo"],
    )
    # Small model: everything fits comfortably in VMEM on all generations
    # (well under v7x's 64 MiB), so run as a single invocation (no grid) with
    # whole-array VMEM-resident blocks.
    return pl.pallas_call(
        residual_net_kernel,
        out_shape=jax.ShapeDtypeStruct((B, 1), jnp.float32),
        in_specs=[pl.BlockSpec(memory_space=pltpu.MemorySpace.VMEM)] * len(args),
        out_specs=pl.BlockSpec(memory_space=pltpu.MemorySpace.VMEM),
    )(*args)


def init_params(key, input_shape):
    """Deterministic synthetic parameters (PyTorch-like uniform(-1/sqrt(fan_in)))."""
    ks = jax.random.split(key, 8)

    def lin(kw, kb, fan_in, fan_out):
        bound = 1.0 / jnp.sqrt(jnp.float32(fan_in))
        # stored pre-transposed: (fan_in, fan_out); bias as (1, fan_out)
        w = jax.random.uniform(kw, (fan_in, fan_out), jnp.float32, -bound, bound)
        b = jax.random.uniform(kb, (1, fan_out), jnp.float32, -bound, bound)
        return w, b

    w1, b1 = lin(ks[0], ks[1], input_shape, HIDDEN)
    rw1, rb1 = lin(ks[2], ks[3], HIDDEN, HIDDEN)
    rw2, rb2 = lin(ks[4], ks[5], HIDDEN, HIDDEN)
    wo, bo = lin(ks[6], ks[7], HIDDEN, 1)
    return {
        "w1": w1, "b1": b1,
        # rb1/rb2 exist in the PyTorch module but are mathematically inert
        # (cancelled by training-mode BN); kept for the reference only,
        # not passed to the kernel.
        "rw1": rw1, "rb1": rb1,
        "g1": jnp.ones((1, HIDDEN), jnp.float32),
        "be1": jnp.zeros((1, HIDDEN), jnp.float32),
        "rw2": rw2, "rb2": rb2,
        "g2": jnp.ones((1, HIDDEN), jnp.float32),
        "be2": jnp.zeros((1, HIDDEN), jnp.float32),
        "wo": wo, "bo": bo,
    }


def residual_net_ref(x, p, hidden_dtype=jnp.float32):
    """Pure-JAX reference matching the PyTorch forward (BN in training mode).

    `hidden_dtype=jnp.bfloat16` mimics the kernel's bf16 MXU inputs (f32
    accumulation) for a precision-matched comparison; the final 128->1
    projection is kept in f32 in both cases (the kernel computes it on the VPU).
    """
    def mm(a, w):
        return jnp.dot(a.astype(hidden_dtype), w.astype(hidden_dtype),
                       preferred_element_type=jnp.float32)

    def bn(t, g, b):
        m = jnp.mean(t, axis=0, keepdims=True)
        v = jnp.mean((t - m) ** 2, axis=0, keepdims=True)
        return g * (t - m) / jnp.sqrt(v + BN_EPS) + b

    h = jax.nn.relu(mm(x, p["w1"]) + p["b1"])
    t = jax.nn.relu(bn(mm(h, p["rw1"]) + p["rb1"], p["g1"], p["be1"]))
    u = bn(mm(t, p["rw2"]) + p["rb2"], p["g2"], p["be2"])
    u = jax.nn.relu(u + h)
    return jnp.dot(u, p["wo"], preferred_element_type=jnp.float32) + p["bo"]


if __name__ == "__main__":
    key = jax.random.PRNGKey(0)
    k_x, k_p = jax.random.split(key)

    # B=128 fills one MXU tile of rows; still tiny (all buffers << VMEM).
    B, INPUT_SHAPE = 128, 32
    x = jax.random.normal(k_x, (B, INPUT_SHAPE), jnp.float32)
    params = init_params(k_p, INPUT_SHAPE)

    out = jax.block_until_ready(residual_net(x, params))
    assert out.shape == (B, 1), out.shape

    # Tight check against a precision-matched reference (validates the
    # bias-drop / fused-BN / single-pass-variance / VPU-reduction rewrites).
    ref_matched = residual_net_ref(x, params, hidden_dtype=jnp.bfloat16)
    assert jnp.allclose(out, ref_matched, atol=1e-3, rtol=1e-3), (
        float(jnp.max(jnp.abs(out - ref_matched))))

    # Loose check against the fully-f32 PyTorch-faithful reference
    # (documents the bf16-MXU accuracy cost).
    ref_f32 = residual_net_ref(x, params, hidden_dtype=jnp.float32)
    assert jnp.allclose(out, ref_f32, atol=1e-1, rtol=1e-1), (
        float(jnp.max(jnp.abs(out - ref_f32))))

    print("KERNEL_OK")
</pallas_src>

<mosaic_0001>
module attributes {stable_mosaic.version = 11 : i64} {
  func.func @residual_net_kernel(%arg0: memref<128x128xbf16, #tpu.memory_space<vmem>>, %arg1: memref<128x128xbf16, #tpu.memory_space<vmem>>, %arg2: memref<1x128xf32, #tpu.memory_space<vmem>>, %arg3: memref<128x128xbf16, #tpu.memory_space<vmem>>, %arg4: memref<1x128xf32, #tpu.memory_space<vmem>>, %arg5: memref<1x128xf32, #tpu.memory_space<vmem>>, %arg6: memref<128x128xbf16, #tpu.memory_space<vmem>>, %arg7: memref<1x128xf32, #tpu.memory_space<vmem>>, %arg8: memref<1x128xf32, #tpu.memory_space<vmem>>, %arg9: memref<1x128xf32, #tpu.memory_space<vmem>>, %arg10: memref<1x1xf32, #tpu.memory_space<vmem>>, %arg11: memref<128x1xf32, #tpu.memory_space<vmem>>) attributes {dimension_semantics = [], scalar_prefetch = 0 : i64, scratch_operands = 0 : i64, tpu.core_type = #tpu.core_type<tc>} {
    %c0 = arith.constant 0 : index
    %c0_0 = arith.constant 0 : index
    %0 = vector.load %arg0[%c0, %c0_0] : memref<128x128xbf16, #tpu.memory_space<vmem>>, vector<128x128xbf16>
    %c0_1 = arith.constant 0 : index
    %c0_2 = arith.constant 0 : index
    %1 = vector.load %arg1[%c0_1, %c0_2] : memref<128x128xbf16, #tpu.memory_space<vmem>>, vector<128x128xbf16>
    %cst = arith.constant dense<0.000000e+00> : vector<128x128xf32>
    %2 = tpu.matmul %0, %1, %cst {dimension_numbers = #tpu.dot_dimension_numbers<[1], [0], [0], [1], [0, 0, 1, 1], [], []>} : vector<128x128xbf16>, vector<128x128xbf16>, vector<128x128xf32> -> vector<128x128xf32>
    %c0_3 = arith.constant 0 : index
    %c0_4 = arith.constant 0 : index
    %3 = vector.load %arg2[%c0_3, %c0_4] : memref<1x128xf32, #tpu.memory_space<vmem>>, vector<1x128xf32>
    %4 = vector.broadcast %3 : vector<1x128xf32> to vector<128x128xf32>
    %5 = arith.addf %2, %4 : vector<128x128xf32>
    %cst_5 = arith.constant 0.000000e+00 : f32
    %6 = vector.broadcast %cst_5 : f32 to vector<128x128xf32>
    %7 = arith.maximumf %5, %6 : vector<128x128xf32>
    %8 = arith.truncf %7 : vector<128x128xf32> to vector<128x128xbf16>
    %c0_6 = arith.constant 0 : index
    %c0_7 = arith.constant 0 : index
    %9 = vector.load %arg3[%c0_6, %c0_7] : memref<128x128xbf16, #tpu.memory_space<vmem>>, vector<128x128xbf16>
    %cst_8 = arith.constant dense<0.000000e+00> : vector<128x128xf32>
    %10 = tpu.matmul %8, %9, %cst_8 {dimension_numbers = #tpu.dot_dimension_numbers<[1], [0], [0], [1], [0, 0, 1, 1], [], []>} : vector<128x128xbf16>, vector<128x128xbf16>, vector<128x128xf32> -> vector<128x128xf32>
    %c0_9 = arith.constant 0 : index
    %c0_10 = arith.constant 0 : index
    %11 = vector.load %arg4[%c0_9, %c0_10] : memref<1x128xf32, #tpu.memory_space<vmem>>, vector<1x128xf32>
    %c0_11 = arith.constant 0 : index
    %c0_12 = arith.constant 0 : index
    %12 = vector.load %arg5[%c0_11, %c0_12] : memref<1x128xf32, #tpu.memory_space<vmem>>, vector<1x128xf32>
    %cst_13 = arith.constant dense<0.000000e+00> : vector<128xf32>
    %13 = vector.multi_reduction <add>, %10, %cst_13 [0] : vector<128x128xf32> to vector<128xf32>
    %14 = vector.shape_cast %13 : vector<128xf32> to vector<1x128xf32>
    %15 = arith.mulf %10, %10 : vector<128x128xf32>
    %cst_14 = arith.constant dense<0.000000e+00> : vector<128xf32>
    %16 = vector.multi_reduction <add>, %15, %cst_14 [0] : vector<128x128xf32> to vector<128xf32>
    %17 = vector.shape_cast %16 : vector<128xf32> to vector<1x128xf32>
    %cst_15 = arith.constant 7.812500e-03 : f32
    %18 = vector.broadcast %cst_15 : f32 to vector<1x128xf32>
    %19 = arith.mulf %14, %18 : vector<1x128xf32>
    %cst_16 = arith.constant 7.812500e-03 : f32
    %20 = vector.broadcast %cst_16 : f32 to vector<1x128xf32>
    %21 = arith.mulf %17, %20 : vector<1x128xf32>
    %22 = arith.mulf %19, %19 : vector<1x128xf32>
    %23 = arith.subf %21, %22 : vector<1x128xf32>
    %cst_17 = arith.constant 0.000000e+00 : f32
    %24 = vector.broadcast %cst_17 : f32 to vector<1x128xf32>
    %25 = arith.maximumf %23, %24 : vector<1x128xf32>
    %cst_18 = arith.constant 9.99999974E-6 : f32
    %26 = vector.broadcast %cst_18 : f32 to vector<1x128xf32>
    %27 = arith.addf %25, %26 : vector<1x128xf32>
    %28 = math.rsqrt %27 : vector<1x128xf32>
    %29 = arith.mulf %11, %28 : vector<1x128xf32>
    %30 = arith.mulf %19, %29 : vector<1x128xf32>
    %31 = arith.subf %12, %30 : vector<1x128xf32>
    %32 = vector.broadcast %29 : vector<1x128xf32> to vector<128x128xf32>
    %33 = arith.mulf %10, %32 : vector<128x128xf32>
    %34 = vector.broadcast %31 : vector<1x128xf32> to vector<128x128xf32>
    %35 = arith.addf %33, %34 : vector<128x128xf32>
    %cst_19 = arith.constant 0.000000e+00 : f32
    %36 = vector.broadcast %cst_19 : f32 to vector<128x128xf32>
    %37 = arith.maximumf %35, %36 : vector<128x128xf32>
    %38 = arith.truncf %37 : vector<128x128xf32> to vector<128x128xbf16>
    %c0_20 = arith.constant 0 : index
    %c0_21 = arith.constant 0 : index
    %39 = vector.load %arg6[%c0_20, %c0_21] : memref<128x128xbf16, #tpu.memory_space<vmem>>, vector<128x128xbf16>
    %cst_22 = arith.constant dense<0.000000e+00> : vector<128x128xf32>
    %40 = tpu.matmul %38, %39, %cst_22 {dimension_numbers = #tpu.dot_dimension_numbers<[1], [0], [0], [1], [0, 0, 1, 1], [], []>} : vector<128x128xbf16>, vector<128x128xbf16>, vector<128x128xf32> -> vector<128x128xf32>
    %c0_23 = arith.constant 0 : index
    %c0_24 = arith.constant 0 : index
    %41 = vector.load %arg7[%c0_23, %c0_24] : memref<1x128xf32, #tpu.memory_space<vmem>>, vector<1x128xf32>
    %c0_25 = arith.constant 0 : index
    %c0_26 = arith.constant 0 : index
    %42 = vector.load %arg8[%c0_25, %c0_26] : memref<1x128xf32, #tpu.memory_space<vmem>>, vector<1x128xf32>
    %cst_27 = arith.constant dense<0.000000e+00> : vector<128xf32>
    %43 = vector.multi_reduction <add>, %40, %cst_27 [0] : vector<128x128xf32> to vector<128xf32>
    %44 = vector.shape_cast %43 : vector<128xf32> to vector<1x128xf32>
    %45 = arith.mulf %40, %40 : vector<128x128xf32>
    %cst_28 = arith.constant dense<0.000000e+00> : vector<128xf32>
    %46 = vector.multi_reduction <add>, %45, %cst_28 [0] : vector<128x128xf32> to vector<128xf32>
    %47 = vector.shape_cast %46 : vector<128xf32> to vector<1x128xf32>
    %cst_29 = arith.constant 7.812500e-03 : f32
    %48 = vector.broadcast %cst_29 : f32 to vector<1x128xf32>
    %49 = arith.mulf %44, %48 : vector<1x128xf32>
    %cst_30 = arith.constant 7.812500e-03 : f32
    %50 = vector.broadcast %cst_30 : f32 to vector<1x128xf32>
    %51 = arith.mulf %47, %50 : vector<1x128xf32>
    %52 = arith.mulf %49, %49 : vector<1x128xf32>
    %53 = arith.subf %51, %52 : vector<1x128xf32>
    %cst_31 = arith.constant 0.000000e+00 : f32
    %54 = vector.broadcast %cst_31 : f32 to vector<1x128xf32>
    %55 = arith.maximumf %53, %54 : vector<1x128xf32>
    %cst_32 = arith.constant 9.99999974E-6 : f32
    %56 = vector.broadcast %cst_32 : f32 to vector<1x128xf32>
    %57 = arith.addf %55, %56 : vector<1x128xf32>
    %58 = math.rsqrt %57 : vector<1x128xf32>
    %59 = arith.mulf %41, %58 : vector<1x128xf32>
    %60 = arith.mulf %49, %59 : vector<1x128xf32>
    %61 = arith.subf %42, %60 : vector<1x128xf32>
    %62 = vector.broadcast %59 : vector<1x128xf32> to vector<128x128xf32>
    %63 = arith.mulf %40, %62 : vector<128x128xf32>
    %64 = vector.broadcast %61 : vector<1x128xf32> to vector<128x128xf32>
    %65 = arith.addf %63, %64 : vector<128x128xf32>
    %66 = arith.addf %65, %7 : vector<128x128xf32>
    %cst_33 = arith.constant 0.000000e+00 : f32
    %67 = vector.broadcast %cst_33 : f32 to vector<128x128xf32>
    %68 = arith.maximumf %66, %67 : vector<128x128xf32>
    %c0_34 = arith.constant 0 : index
    %c0_35 = arith.constant 0 : index
    %69 = vector.load %arg9[%c0_34, %c0_35] : memref<1x128xf32, #tpu.memory_space<vmem>>, vector<1x128xf32>
    %70 = vector.broadcast %69 : vector<1x128xf32> to vector<128x128xf32>
    %71 = arith.mulf %68, %70 : vector<128x128xf32>
    %cst_36 = arith.constant dense<0.000000e+00> : vector<128xf32>
    %72 = vector.multi_reduction <add>, %71, %cst_36 [1] : vector<128x128xf32> to vector<128xf32>
    %73 = vector.shape_cast %72 : vector<128xf32> to vector<128x1xf32>
    %c0_37 = arith.constant 0 : index
    %c0_38 = arith.constant 0 : index
    %74 = vector.load %arg10[%c0_37, %c0_38] : memref<1x1xf32, #tpu.memory_space<vmem>>, vector<1x1xf32>
    %75 = vector.broadcast %74 : vector<1x1xf32> to vector<128x1xf32>
    %76 = arith.addf %73, %75 : vector<128x1xf32>
    %c0_39 = arith.constant 0 : index
    %c0_40 = arith.constant 0 : index
    %77 = vector.load %arg11[%c0_39, %c0_40] : memref<128x1xf32, #tpu.memory_space<vmem>>, vector<128x1xf32>
    tpu.vector_store %arg11[%c0_39, %c0_40], %76 {strides = array<i32>} : memref<128x1xf32, #tpu.memory_space<vmem>>, vector<128x1xf32>,
    return
  }
}

</mosaic_0001>

<bundles_post_ra>
// kernel: tpu_custom_call.1
= control target key start
LH: loop header
LB: loop body
LE: loop exit
PB: predicated region body
PF: predicated region fallthrough
CT: control target
= control target key end

     0   :  { %s1740_s0 = inlined_call_operand.hbm [shape: bf16[128,128], index: 0, kind: input, shape index: {}]   ;;  %s1741_s1 = inlined_call_operand.hbm [shape: bf16[128,128], index: 1, kind: input, shape index: {}]   ;;  %s1742_s2 = inlined_call_operand.vmem [shape: f32[1,128], index: 2, kind: input, shape index: {}]   ;;  %s1743_s3 = inlined_call_operand.hbm [shape: bf16[128,128], index: 3, kind: input, shape index: {}]   ;;  %s1744_s4 = inlined_call_operand.vmem [shape: f32[1,128], index: 4, kind: input, shape index: {}]   ;;  %s1745_s5 = inlined_call_operand.vmem [shape: f32[1,128], index: 5, kind: input, shape index: {}]   ;;  %s1746_s6 = inlined_call_operand.hbm [shape: bf16[128,128], index: 6, kind: input, shape index: {}]   ;;  %s1747_s7 = inlined_call_operand.vmem [shape: f32[1,128], index: 7, kind: input, shape index: {}]   ;;  %s1748_s8 = inlined_call_operand.vmem [shape: f32[1,128], index: 8, kind: input, shape index: {}]   ;;  %s1749_s9 = inlined_call_operand.vmem [shape: f32[1,128], index: 9, kind: input, shape index: {}]   ;;  %s1750_s10 = inlined_call_operand.<no memory space> [shape: f32[1,1], index: 10, kind: input, shape index: {}]   ;;  %s1751_s11 = inlined_call_operand.vmem [shape: f32[128,1], index: 11, kind: output, shape index: {}]  }
   0x1   :  { %v16_v0 = vstv %s1750_s10 }
   0x2   :  { %17 = vst [vmem:[#allocation2] sm:$0x1] %v16_v0 }
   0x3   :  { %18 = vsyncpa [#allocation4], 0 }
   0x4   :  { %19 = vsyncpa [#allocation6], 0 }
   0x5   :  { %20 = vsyncpa [#allocation9], 0  ;;  %s38_s21 = sshll.u32 %s1741_s1, 4  ;;  %s1219_s22 = smov [#allocation5]   ;;  %s39_s21 = int_to_ptr.hbm [resolvable:$true] %s38_s21 }
   0x6   :  { %s40_s23 = sshll.u32 %s1219_s22, 4  ;;  %s25_s26 = sshll.u32 %s1740_s0, 4  ;;  %s41_s23 = int_to_ptr.vmem [resolvable:$true] %s40_s23  ;;  %s26_s26 = int_to_ptr.hbm [resolvable:$true] %s25_s26 }
   0x7   :  { %s1220_s27 = smov 64   ;;  %s1221_s28 = smov 4  }
   0x8   :  { %46 = dma.hbm_to_vmem [thread:$0]  %s39_s21, 1024, %s41_s23, [#allocation6], %s1220_s27, %s1220_s27, %s1221_s28  }
   0x9   :  { %s1222_s10 = smov [#allocation3]   ;;  %s53_s13 = sshll.u32 %s1743_s3, 4  ;;  %s54_s13 = int_to_ptr.hbm [resolvable:$true] %s53_s13 }
   0xa   :  { %s27_s29 = sshll.u32 %s1222_s10, 4  ;;  %s70_s15 = sshll.u32 %s1746_s6, 4  ;;  %s28_s29 = int_to_ptr.vmem [resolvable:$true] %s27_s29  ;;  %s71_s15 = int_to_ptr.hbm [resolvable:$true] %s70_s15 }
   0xb   :  { %33 = dma.hbm_to_vmem [thread:$0]  %s26_s26, 1024, %s28_s29, [#allocation4], %s1220_s27, %s1220_s27, %s1221_s28  }
   0xc   :  { %s1223_s16 = smov [#allocation7]   ;;  %s1224_s0 = smov [#allocation8]  }
   0xd   :  { %s55_s17 = sshll.u32 %s1223_s16, 4  ;;  %s72_s18 = sshll.u32 %s1224_s0, 4  ;;  %s56_s17 = int_to_ptr.vmem [resolvable:$true] %s55_s17  ;;  %s73_s18 = int_to_ptr.vmem [resolvable:$true] %s72_s18 }
   0xe   :  { %61 = dma.hbm_to_vmem [thread:$0]  %s54_s13, 1024, %s56_s17, [#allocation6], %s1220_s27, %s1220_s27, %s1221_s28  }
   0xf   :  { %78 = dma.hbm_to_vmem [thread:$0]  %s71_s15, 1024, %s73_s18, [#allocation9], %s1220_s27, %s1220_s27, %s1221_s28  }
  0x10   :  { %1213 = dma.done.wait [#allocation4], 1024  }
  0x11   :  { %1214 = vsyncadd [#allocation4], 4294966272 }
  0x12   :  { %1215 = dma.done.wait [#allocation6], 2048  }
  0x13   :  { %1216 = vsyncadd [#allocation6], 4294965248 }
  0x14   :  { %1217 = dma.done.wait [#allocation9], 1024  }
  0x15   :  { %1218 = vsyncadd [#allocation9], 4294966272  ;;  %v1063_v1 = vld [vmem:[#allocation5 + $0x38] sm:$0xff]  ;;  %v1062_v2 = vld [vmem:[#allocation5 + $0x30] sm:$0xff]  ;;  %vm896_vm6 = vcmask 7168  }
  0x16   :  { %235 = vmatpush.bf16.msra.mxu0 %v1063_v1  ;;  %1080 = vmatpush.bf16.msra.mxu3 %v1063_v1  ;;  %v1061_v3 = vld [vmem:[#allocation5 + $0x28] sm:$0xff]  ;;  %v1060_v4 = vld [vmem:[#allocation5 + $0x20] sm:$0xff]  ;;  %v1059_v5 = vld [vmem:[#allocation5 + $0x18] sm:$0xff] }
  0x17   :  { %v1058_v6 = vld [vmem:[#allocation5 + $0x10] sm:$0xff]  ;;  %v1057_v7 = vld [vmem:[#allocation5 + $0x8] sm:$0xff]  ;;  %v1056_v8 = vld [vmem:[#allocation5] sm:$0xff] }
  0x18   :  { %v1048_v9 = vld [vmem:[#allocation3] sm:$0xff]  ;;  %v1054_v10 = vld [vmem:[#allocation3 + $0x30] sm:$0xff]  ;;  %v1049_v11 = vld [vmem:[#allocation3 + $0x8] sm:$0xff] }
  0x19   :  { %v1055_v12 = vld [vmem:[#allocation3 + $0x38] sm:$0xff]  ;;  %v1050_v13 = vld [vmem:[#allocation3 + $0x10] sm:$0xff]  ;;  %v1069_v17 = vld [vmem:[#allocation7 + $0x28] sm:$0xff] }
  0x1a   :  { %236 = vmatpush.bf16.msra.mxu0 %v1062_v2  ;;  %1081 = vmatpush.bf16.msra.mxu3 %v1062_v2  ;;  %v1051_v14 = vld [vmem:[#allocation3 + $0x18] sm:$0xff]  ;;  %v1070_v16 = vld [vmem:[#allocation7 + $0x30] sm:$0xff]  ;;  %v1068_v18 = vld [vmem:[#allocation7 + $0x20] sm:$0xff] }
  0x1b   :  { %v1071_v15 = vld [vmem:[#allocation7 + $0x38] sm:$0xff]  ;;  %v1052_v19 = vld [vmem:[#allocation3 + $0x20] sm:$0xff]  ;;  %v1053_v20 = vld [vmem:[#allocation3 + $0x28] sm:$0xff] }
  0x1c   :  { %372 = vmatpush.bf16.msra.mxu1 %v1071_v15  ;;  %v1067_v21 = vld [vmem:[#allocation7 + $0x18] sm:$0xff]  ;;  %v1066_v22 = vld [vmem:[#allocation7 + $0x10] sm:$0xff]  ;;  %v1065_v23 = vld [vmem:[#allocation7 + $0x8] sm:$0xff] }
  0x1d   :  { %v1064_v24 = vld [vmem:[#allocation7] sm:$0xff]  ;;  %v1110_v26 = vld [vmem:[%s1742_s2] ss:$0 sm:$0xff] }
  0x1e   :  { %237 = vmatpush.bf16.msra.mxu0 %v1061_v3  ;;  %1082 = vmatpush.bf16.msra.mxu3 %v1061_v3 }
  0x20   :  { %373 = vmatpush.bf16.msra.mxu1 %v1070_v16 }
  0x22   :  { %238 = vmatpush.bf16.msra.mxu0 %v1060_v4  ;;  %1083 = vmatpush.bf16.msra.mxu3 %v1060_v4 }
  0x24   :  { %374 = vmatpush.bf16.msra.mxu1 %v1069_v17 }
  0x26   :  { %239 = vmatpush.bf16.msra.mxu0 %v1059_v5  ;;  %1084 = vmatpush.bf16.msra.mxu3 %v1059_v5 }
  0x28   :  { %375 = vmatpush.bf16.msra.mxu1 %v1068_v18 }
  0x2a   :  { %240 = vmatpush.bf16.msra.mxu0 %v1058_v6  ;;  %1085 = vmatpush.bf16.msra.mxu3 %v1058_v6 }
  0x2c   :  { %376 = vmatpush.bf16.msra.mxu1 %v1067_v21 }
  0x2e   :  { %241 = vmatpush.bf16.msra.mxu0 %v1057_v7  ;;  %1086 = vmatpush.bf16.msra.mxu3 %v1057_v7 }
  0x30   :  { %377 = vmatpush.bf16.msra.mxu1 %v1066_v22 }
  0x32   :  { %242 = vmatpush.bf16.msra.mxu0 %v1056_v8  ;;  %1087 = vmatpush.bf16.msra.mxu3 %v1056_v8 }
  0x34   :  { %378 = vmatpush.bf16.msra.mxu1 %v1065_v23 }
  0x35   :  { %243 = vmatmul.bf16.vlgmr.msra.gmra.mxu0 %v1048_v9  ;;  %273 = vmatmul.bf16.vlgmr.msra.gmra.mxu3 %v1054_v10 }
  0x36   :  { %1088 = vmatpush.bf16.msrb.mxu3 %v1071_v15 }
  0x38   :  { %379 = vmatpush.bf16.msra.mxu1 %v1064_v24 }
  0x3a   :  { %1089 = vmatpush.bf16.msrb.mxu3 %v1070_v16 }
  0x3e   :  { %1090 = vmatpush.bf16.msrb.mxu3 %v1069_v17 }
  0x42   :  { %1091 = vmatpush.bf16.msrb.mxu3 %v1068_v18 }
  0x45   :  { %248 = vmatmul.bf16.gmra.mxu0 %v1049_v11  ;;  %278 = vmatmul.bf16.gmra.mxu3 %v1055_v12 }
  0x46   :  { %1092 = vmatpush.bf16.msrb.mxu3 %v1067_v21 }
  0x4a   :  { %1093 = vmatpush.bf16.msrb.mxu3 %v1066_v22 }
  0x4e   :  { %1094 = vmatpush.bf16.msrb.mxu3 %v1065_v23 }
  0x52   :  { %1095 = vmatpush.bf16.msrb.mxu3 %v1064_v24 }
  0x55   :  { %253 = vmatmul.bf16.gmra.mxu0 %v1050_v13 }
  0x65   :  { %258 = vmatmul.bf16.gmra.mxu0 %v1051_v14 }
  0x75   :  { %263 = vmatmul.bf16.gmra.mxu0 %v1052_v19 }
  0x85   :  { %268 = vmatmul.bf16.gmra.mxu0 %v1053_v20 }
  0xb2   :  { %v244_v25 = vpop.f32.mrf.mxu0 }
  0xb3   :  { %v1303_v27 = vadd.f32 %v1110_v26, %v244_v25 }
  0xb5   :  { %v284_v30 = vmax.f32 %v1303_v27, 0.0 }
  0xb8   :  { %v274_v34 = vpop.f32.mrf.mxu3 }
  0xb9   :  { %v1315_v36 = vadd.f32 %v1110_v26, %v274_v34 }
  0xba   :  { %v246_v28 = vpop.f32.mrf.mxu0 }
  0xbb   :  { %v1305_v29 = vadd.f32 %v1110_v26, %v246_v28  ;;  %v1753_v42 = vmax.f32 %v1315_v36, 0.0 }
  0xbd   :  { %v285_v31 = vmax.f32 %v1305_v29, 0.0 }
  0xbf   :  { %v300_v32 = vpack.c.bf16 %v285_v31, %v284_v30 }
  0xc0   :  { %v276_v39 = vpop.f32.mrf.mxu3 }
  0xc1   :  { %380 = vmatmul.bf16.vlgmr.msra.gmra.mxu1 %v300_v32  ;;  %v1322_v43 = vadd.f32 %v1110_v26, %v276_v39 }
  0xc2   :  { %v249_v33 = vpop.f32.mrf.mxu0 }
  0xc3   :  { %v1313_v35 = vadd.f32 %v1110_v26, %v249_v33  ;;  %v1754_v45 = vmax.f32 %v1322_v43, 0.0 }
  0xc5   :  { %v286_v40 = vmax.f32 %v1313_v35, 0.0  ;;  %v306_v46 = vpack.c.bf16 %v1754_v45, %v1753_v42 }
  0xc7   :  { %410 = vmatmul.bf16.vlgmr.msrb.gmra.mxu3 %v306_v46 }
  0xc8   :  { %v279_v48 = vpop.f32.mrf.mxu3 }
  0xc9   :  { %v1335_v50 = vadd.f32 %v1110_v26, %v279_v48 }
  0xca   :  { %v251_v37 = vpop.f32.mrf.mxu0 }
  0xcb   :  { %v1317_v38 = vadd.f32 %v1110_v26, %v251_v37  ;;  %v1755_v56 = vmax.f32 %v1335_v50, 0.0 }
  0xcd   :  { %v287_v41 = vmax.f32 %v1317_v38, 0.0 }
  0xcf   :  { %v301_v44 = vpack.c.bf16 %v287_v41, %v286_v40 }
  0xd0   :  { %v281_v53 = vpop.f32.mrf.mxu3 }
  0xd1   :  { %385 = vmatmul.bf16.gmra.mxu1 %v301_v44  ;;  %v1342_v57 = vadd.f32 %v1110_v26, %v281_v53 }
  0xd2   :  { %v254_v47 = vpop.f32.mrf.mxu0 }
  0xd3   :  { %v1333_v49 = vadd.f32 %v1110_v26, %v254_v47  ;;  %v1752_v59 = vmax.f32 %v1342_v57, 0.0 }
  0xd5   :  { %v288_v54 = vmax.f32 %v1333_v49, 0.0  ;;  %v307_v60 = vpack.c.bf16 %v1752_v59, %v1755_v56 }
  0xd7   :  { %415 = vmatmul.bf16.gmra.mxu3 %v307_v60 }
  0xda   :  { %v256_v51 = vpop.f32.mrf.mxu0 }
  0xdb   :  { %v1337_v52 = vadd.f32 %v1110_v26, %v256_v51 }
  0xdd   :  { %v289_v55 = vmax.f32 %v1337_v52, 0.0 }
  0xdf   :  { %v302_v58 = vpack.c.bf16 %v289_v55, %v288_v54 }
  0xe1   :  { %390 = vmatmul.bf16.gmra.mxu1 %v302_v58 }
  0xe2   :  { %v259_v61 = vpop.f32.mrf.mxu0 }
  0xe3   :  { %v1353_v62 = vadd.f32 %v1110_v26, %v259_v61 }
  0xe5   :  { %v1759_v1 = vmax.f32 %v1353_v62, 0.0 }
  0xea   :  { %v261_v63 = vpop.f32.mrf.mxu0 }
  0xeb   :  { %v1355_v0 = vadd.f32 %v1110_v26, %v261_v63 }
  0xed   :  { %v291_v2 = vmax.f32 %v1355_v0, 0.0 }
  0xef   :  { %v303_v3 = vpack.c.bf16 %v291_v2, %v1759_v1 }
  0xf1   :  { %395 = vmatmul.bf16.gmra.mxu1 %v303_v3 }
  0xf2   :  { %v264_v4 = vpop.f32.mrf.mxu0 }
  0xf3   :  { %v1363_v5 = vadd.f32 %v1110_v26, %v264_v4 }
  0xf5   :  { %v292_v8 = vmax.f32 %v1363_v5, 0.0 }
  0xfa   :  { %v266_v6 = vpop.f32.mrf.mxu0 }
  0xfb   :  { %v1365_v7 = vadd.f32 %v1110_v26, %v266_v6 }
  0xfd   :  { %v1756_v9 = vmax.f32 %v1365_v7, 0.0 }
  0xff   :  { %v304_v10 = vpack.c.bf16 %v1756_v9, %v292_v8 }
 0x101   :  { %400 = vmatmul.bf16.gmra.mxu1 %v304_v10 }
 0x102   :  { %v269_v11 = vpop.f32.mrf.mxu0 }
 0x103   :  { %v1373_v12 = vadd.f32 %v1110_v26, %v269_v11 }
 0x105   :  { %v1757_v15 = vmax.f32 %v1373_v12, 0.0 }
 0x10a   :  { %v271_v13 = vpop.f32.mrf.mxu0 }
 0x10b   :  { %v1375_v14 = vadd.f32 %v1110_v26, %v271_v13 }
 0x10d   :  { %v1758_v16 = vmax.f32 %v1375_v14, 0.0 }
 0x10f   :  { %v305_v17 = vpack.c.bf16 %v1758_v16, %v1757_v15 }
 0x111   :  { %405 = vmatmul.bf16.gmra.mxu1 %v305_v17 }
 0x13e   :  { %v1383_v18 = vpop.f32.mrf.mxu1 }
 0x13f   :  { %v444_v33 = vmul.f32 %v1383_v18, %v1383_v18 }
 0x146   :  { %v1385_v19 = vpop.f32.mrf.mxu1 }
 0x147   :  { %v445_v32 = vmul.f32 %v1385_v19, %v1385_v19  ;;  %v423_v34 = vadd.f32 %v1385_v19, %v1383_v18 }
 0x149   :  { %v460_v39 = vadd.f32 %v445_v32, %v444_v33 }
 0x14a   :  { %v1399_v26 = vpop.f32.mrf.mxu3 }
 0x14e   :  { %v1387_v20 = vpop.f32.mrf.mxu1 }
 0x14f   :  { %v446_v37 = vmul.f32 %v1387_v20, %v1387_v20  ;;  %v424_v44 = vadd.f32 %v423_v34, %v1387_v20 }
 0x151   :  { %v461_v48 = vadd.f32 %v460_v39, %v446_v37 }
 0x152   :  { %v1419_v58 = vpop.f32.mrf.mxu3 }
 0x156   :  { %v1389_v21 = vpop.f32.mrf.mxu1 }
 0x157   :  { %v447_v46 = vmul.f32 %v1389_v21, %v1389_v21  ;;  %v425_v51 = vadd.f32 %v424_v44, %v1389_v21 }
 0x159   :  { %v462_v60 = vadd.f32 %v461_v48, %v447_v46 }
 0x15a   :  { %v1438_v46 = vpop.f32.mrf.mxu3 }
 0x15e   :  { %v1391_v22 = vpop.f32.mrf.mxu1 }
 0x15f   :  { %v448_v53 = vmul.f32 %v1391_v22, %v1391_v22  ;;  %v426_v61 = vadd.f32 %v425_v51, %v1391_v22 }
 0x161   :  { %v463_v3 = vadd.f32 %v462_v60, %v448_v53 }
 0x166   :  { %v1393_v23 = vpop.f32.mrf.mxu1 }
 0x167   :  { %v449_v63 = vmul.f32 %v1393_v23, %v1393_v23  ;;  %v427_v4 = vadd.f32 %v426_v61, %v1393_v23 }
 0x169   :  { %v464_v10 = vadd.f32 %v463_v3, %v449_v63  ;;  %v1079_v3 = vld [vmem:[#allocation8 + $0x38] sm:$0xff] }
 0x16a   :  { %626 = vmatpush.bf16.msra.mxu2 %v1079_v3  ;;  %1096 = vmatpush.bf16.msra.mxu3 %v1079_v3 }
 0x16e   :  { %v1395_v24 = vpop.f32.mrf.mxu1 }
 0x16f   :  { %v450_v6 = vmul.f32 %v1395_v24, %v1395_v24  ;;  %v428_v11 = vadd.f32 %v427_v4, %v1395_v24 }
 0x171   :  { %v465_v32 = vadd.f32 %v464_v10, %v450_v6 }
 0x176   :  { %v1397_v25 = vpop.f32.mrf.mxu1 }
 0x177   :  { %v451_v13 = vmul.f32 %v1397_v25, %v1397_v25  ;;  %v429_v33 = vadd.f32 %v428_v11, %v1397_v25  ;;  %v456_v11 = vmul.f32 %v1399_v26, %v1399_v26 }
 0x179   :  { %v466_v37 = vadd.f32 %v465_v32, %v451_v13 }
 0x17e   :  { %v1401_v28 = vpop.f32.mrf.mxu1 }
 0x17f   :  { %v452_v34 = vmul.f32 %v1401_v28, %v1401_v28  ;;  %v430_v39 = vadd.f32 %v429_v33, %v1401_v28  ;;  %v1078_v33 = vld [vmem:[#allocation8 + $0x30] sm:$0xff] }
 0x180   :  { %627 = vmatpush.bf16.msra.mxu2 %v1078_v33  ;;  %1097 = vmatpush.bf16.msra.mxu3 %v1078_v33 }
 0x181   :  { %v467_v48 = vadd.f32 %v466_v37, %v452_v34  ;;  %v457_v34 = vmul.f32 %v1419_v58, %v1419_v58 }
 0x186   :  { %v1414_v47 = vpop.f32.mrf.mxu1 }
 0x187   :  { %v453_v44 = vmul.f32 %v1414_v47, %v1414_v47  ;;  %v431_v51 = vadd.f32 %v430_v39, %v1414_v47 }
 0x189   :  { %v468_v60 = vadd.f32 %v467_v48, %v453_v44  ;;  %v1455_v44 = vpop.f32.mrf.mxu3  ;;  %v458_v48 = vmul.f32 %v1438_v46, %v1438_v46 }
 0x18e   :  { %v1430_v17 = vpop.f32.mrf.mxu1 }
 0x18f   :  { %v454_v53 = vmul.f32 %v1430_v17, %v1430_v17  ;;  %v432_v61 = vadd.f32 %v431_v51, %v1430_v17 }
 0x191   :  { %v469_v4 = vadd.f32 %v468_v60, %v454_v53  ;;  %v1077_v60 = vld [vmem:[#allocation8 + $0x28] sm:$0xff] }
 0x192   :  { %628 = vmatpush.bf16.msra.mxu2 %v1077_v60  ;;  %1098 = vmatpush.bf16.msra.mxu3 %v1077_v60 }
 0x196   :  { %v1444_v63 = vpop.f32.mrf.mxu1 }
 0x197   :  { %v433_v6 = vadd.f32 %v432_v61, %v1444_v63  ;;  %v455_v10 = vmul.f32 %v1444_v63, %v1444_v63  ;;  %v459_v61 = vmul.f32 %v1455_v44, %v1455_v44 }
 0x199   :  { %v434_v13 = vadd.f32 %v433_v6, %v1399_v26  ;;  %v470_v32 = vadd.f32 %v469_v4, %v455_v10 }
 0x19b   :  { %v435_v37 = vadd.f32 %v434_v13, %v1419_v58  ;;  %v471_v39 = vadd.f32 %v470_v32, %v456_v11  ;;  %v1076_v11 = vld [vmem:[#allocation8 + $0x20] sm:$0xff] }
 0x19c   :  { %629 = vmatpush.bf16.msra.mxu2 %v1076_v11  ;;  %1099 = vmatpush.bf16.msra.mxu3 %v1076_v11  ;;  %v1072_v11 = vld [vmem:[#allocation8] sm:$0xff] }
 0x19d   :  { %v436_v51 = vadd.f32 %v435_v37, %v1438_v46  ;;  %v472_v53 = vadd.f32 %v471_v39, %v457_v34  ;;  %v1075_v37 = vld [vmem:[#allocation8 + $0x18] sm:$0xff] }
 0x19f   :  { %v437_v3 = vadd.f32 %v436_v51, %v1455_v44  ;;  %v473_v4 = vadd.f32 %v472_v53, %v458_v48  ;;  %v1074_v51 = vld [vmem:[#allocation8 + $0x10] sm:$0xff] }
 0x1a0   :  { %630 = vmatpush.bf16.msra.mxu2 %v1075_v37  ;;  %1100 = vmatpush.bf16.msra.mxu3 %v1075_v37 }
 0x1a1   :  { %v438_v6 = vrot.slane %v437_v3, 4  ;;  %v474_v10 = vadd.f32 %v473_v4, %v459_v61 }
 0x1a3   :  { %v439_v13 = vadd.f32 %v438_v6, %v437_v3  ;;  %v475_v32 = vrot.slane %v474_v10, 4  ;;  %v1073_v3 = vld [vmem:[#allocation8 + $0x8] sm:$0xff] }
 0x1a4   :  { %631 = vmatpush.bf16.msra.mxu2 %v1074_v51  ;;  %1101 = vmatpush.bf16.msra.mxu3 %v1074_v51 }
 0x1a5   :  { %v440_v33 = vrot.slane %v439_v13, 2  ;;  %v476_v59 = vadd.f32 %v475_v32, %v474_v10 }
 0x1a7   :  { %v441_v34 = vadd.f32 %v440_v33, %v439_v13  ;;  %v477_v39 = vrot.slane %v476_v59, 2 }
 0x1a8   :  { %632 = vmatpush.bf16.msra.mxu2 %v1073_v3  ;;  %1102 = vmatpush.bf16.msra.mxu3 %v1073_v3 }
 0x1a9   :  { %v442_v42 = vrot.slane %v441_v34, 1  ;;  %v478_v45 = vadd.f32 %v477_v39, %v476_v59 }
 0x1ab   :  { %v443_v48 = vadd.f32 %v442_v42, %v441_v34  ;;  %v479_v53 = vrot.slane %v478_v45, 1 }
 0x1ac   :  { %633 = vmatpush.bf16.msra.mxu2 %v1072_v11  ;;  %1103 = vmatpush.bf16.msra.mxu3 %v1072_v11 }
 0x1ad   :  { %v480_v60 = vadd.f32 %v479_v53, %v478_v45  ;;  %v481_v61 = vmul.f32 0.0078125, %v443_v48  ;;  %v421_v45 = vld [vmem:[%s1744_s4] sm:$0x1] }
 0x1ae   :  { %v422_v53 = vld [vmem:[%s1745_s5] sm:$0x1] }
 0x1af   :  { %v482_v4 = vmul.f32 0.0078125, %v480_v60  ;;  %v483_v6 = vmul.f32 %v481_v61, %v481_v61 }
 0x1b1   :  { %v484_v10 = vsub.f32 %v482_v4, %v483_v6 }
 0x1b3   :  { %v485_v13 = vmax.f32 %v484_v10, 0.0 }
 0x1b5   :  { %v486_v32 = vadd.f32 1e-05, %v485_v13 }
 0x1b7   :  { %1113 = vrsqrt.f32 %v486_v32  ;;  %vm493_vm1 = vweird.f32 %v486_v32 }
 0x1bd   :  { %v1114_v59 = vpop.eup %1113 }
 0x1be   :  { %v488_v33 = vmul.f32 %v1114_v59, %v486_v32  ;;  %vm494_vm0 = vweird.f32 %v1114_v59 }
 0x1bf   :  { %vm495_vm2 = vmor %vm493_vm1, %vm494_vm0 }
 0x1c0   :  { %v489_v42 = vmul.f32 %v1114_v59, %v488_v33 }
 0x1c2   :  { %v490_v37 = vmul.f32 0.5, %v489_v42 }
 0x1c4   :  { %v491_v34 = vsub.f32 1.5, %v490_v37 }
 0x1c6   :  { %v492_v39 = vmul.f32 %v1114_v59, %v491_v34 }
 0x1c8   :  { %v496_v51 = vsel %vm495_vm2, %v1114_v59, %v492_v39 }
 0x1c9   :  { %v497_v48 = vmul.f32 %v496_v51, %v421_v45 }
 0x1cb   :  { %v498_v60 = vmul.f32 %v497_v48, %v481_v61  ;;  %v501_v3 = vperm.slane %v497_v48, 0 }
 0x1cd   :  { %v499_v4 = vsub.f32 %v422_v53, %v498_v60  ;;  %v514_v6 = vmul.f32 %v501_v3, %v1444_v63  ;;  %v503_v11 = vmul.f32 %v501_v3, %v1383_v18  ;;  %v504_v13 = vmul.f32 %v501_v3, %v1385_v19 }
 0x1ce   :  { %v515_v33 = vmul.f32 %v501_v3, %v1399_v26  ;;  %v516_v32 = vmul.f32 %v501_v3, %v1419_v58  ;;  %v511_v60 = vmul.f32 %v501_v3, %v1401_v28  ;;  %v512_v18 = vmul.f32 %v501_v3, %v1414_v47 }
 0x1cf   :  { %v520_v10 = vperm.slane %v499_v4, 0  ;;  %v513_v26 = vmul.f32 %v501_v3, %v1430_v17  ;;  %v518_v28 = vmul.f32 %v501_v3, %v1455_v44 }
 0x1d1   :  { %v533_v59 = vadd.f32 %v520_v10, %v514_v6  ;;  %v522_v42 = vadd.f32 %v520_v10, %v503_v11  ;;  %v523_v37 = vadd.f32 %v520_v10, %v504_v13  ;;  %v534_v34 = vadd.f32 %v520_v10, %v515_v33 }
 0x1d2   :  { %v535_v45 = vadd.f32 %v520_v10, %v516_v32  ;;  %v530_v19 = vadd.f32 %v520_v10, %v511_v60  ;;  %v531_v58 = vadd.f32 %v520_v10, %v512_v18  ;;  %v532_v6 = vadd.f32 %v520_v10, %v513_v26 }
 0x1d3   :  { %v538_v39 = vmax.f32 %v522_v42, 0.0  ;;  %v539_v61 = vmax.f32 %v523_v37, 0.0  ;;  %v550_v51 = vmax.f32 %v534_v34, 0.0  ;;  %v549_v11 = vmax.f32 %v533_v59, 0.0 }
 0x1d4   :  { %v551_v48 = vmax.f32 %v535_v45, 0.0  ;;  %v546_v4 = vmax.f32 %v530_v19, 0.0  ;;  %v505_v13 = vmul.f32 %v501_v3, %v1387_v20  ;;  %v506_v33 = vmul.f32 %v501_v3, %v1389_v21 }
 0x1d5   :  { %v554_v53 = vpack.c.bf16 %v539_v61, %v538_v39  ;;  %v547_v32 = vmax.f32 %v531_v58, 0.0  ;;  %v517_v42 = vmul.f32 %v501_v3, %v1438_v46  ;;  %v548_v37 = vmax.f32 %v532_v6, 0.0 }
 0x1d6   :  { %v560_v63 = vpack.c.bf16 %v551_v48, %v550_v51  ;;  %v524_v34 = vadd.f32 %v520_v10, %v505_v13  ;;  %v525_v47 = vadd.f32 %v520_v10, %v506_v33  ;;  %v537_v61 = vadd.f32 %v520_v10, %v518_v28 }
 0x1d7   :  { %634 = vmatmul.bf16.vlgmr.msra.gmra.mxu2 %v554_v53  ;;  %v558_v45 = vpack.c.bf16 %v547_v32, %v546_v4  ;;  %v536_v39 = vadd.f32 %v520_v10, %v517_v42  ;;  %v559_v17 = vpack.c.bf16 %v549_v11, %v548_v37  ;;  %v507_v21 = vmul.f32 %v501_v3, %v1391_v22 }
 0x1d8   :  { %664 = vmatmul.bf16.vlgmr.msra.gmra.mxu3 %v560_v63  ;;  %v540_v51 = vmax.f32 %v524_v34, 0.0  ;;  %v541_v48 = vmax.f32 %v525_v47, 0.0  ;;  %v553_v59 = vmax.f32 %v537_v61, 0.0  ;;  %v508_v46 = vmul.f32 %v501_v3, %v1393_v23 }
 0x1d9   :  { %v552_v53 = vmax.f32 %v536_v39, 0.0  ;;  %v526_v44 = vadd.f32 %v520_v10, %v507_v21  ;;  %v509_v58 = vmul.f32 %v501_v3, %v1395_v24  ;;  %v510_v4 = vmul.f32 %v501_v3, %v1397_v25 }
 0x1da   :  { %v555_v63 = vpack.c.bf16 %v541_v48, %v540_v51  ;;  %v527_v60 = vadd.f32 %v520_v10, %v508_v46 }
 0x1db   :  { %v561_v20 = vpack.c.bf16 %v553_v59, %v552_v53  ;;  %v542_v18 = vmax.f32 %v526_v44, 0.0  ;;  %v528_v6 = vadd.f32 %v520_v10, %v509_v58  ;;  %v529_v11 = vadd.f32 %v520_v10, %v510_v4 }
 0x1dc   :  { %v543_v19 = vmax.f32 %v527_v60, 0.0 }
 0x1dd   :  { %v544_v13 = vmax.f32 %v528_v6, 0.0  ;;  %v545_v33 = vmax.f32 %v529_v11, 0.0 }
 0x1de   :  { %v556_v26 = vpack.c.bf16 %v543_v19, %v542_v18 }
 0x1df   :  { %v557_v32 = vpack.c.bf16 %v545_v33, %v544_v13 }
 0x1e7   :  { %639 = vmatmul.bf16.gmra.mxu2 %v555_v63 }
 0x1e8   :  { %669 = vmatmul.bf16.gmra.mxu3 %v561_v20 }
 0x1f7   :  { %644 = vmatmul.bf16.gmra.mxu2 %v556_v26 }
 0x207   :  { %649 = vmatmul.bf16.gmra.mxu2 %v557_v32 }
 0x217   :  { %654 = vmatmul.bf16.gmra.mxu2 %v558_v45 }
 0x227   :  { %659 = vmatmul.bf16.gmra.mxu2 %v559_v17 }
 0x25a   :  { %v1485_v22 = vpop.f32.mrf.mxu2 }
 0x25b   :  { %v1501_v10 = vpop.f32.mrf.mxu3  ;;  %v698_v45 = vmul.f32 %v1485_v22, %v1485_v22 }
 0x262   :  { %v1487_v23 = vpop.f32.mrf.mxu2 }
 0x263   :  { %v699_v47 = vmul.f32 %v1487_v23, %v1487_v23  ;;  %v677_v39 = vadd.f32 %v1487_v23, %v1485_v22  ;;  %v1521_v21 = vpop.f32.mrf.mxu3 }
 0x265   :  { %v714_v17 = vadd.f32 %v699_v47, %v698_v45 }
 0x26a   :  { %v1489_v42 = vpop.f32.mrf.mxu2 }
 0x26b   :  { %v700_v61 = vmul.f32 %v1489_v42, %v1489_v42  ;;  %v678_v51 = vadd.f32 %v677_v39, %v1489_v42 }
 0x26d   :  { %v715_v59 = vadd.f32 %v714_v17, %v700_v61  ;;  %v1540_v61 = vpop.f32.mrf.mxu3 }
 0x272   :  { %v1491_v28 = vpop.f32.mrf.mxu2 }
 0x273   :  { %v701_v48 = vmul.f32 %v1491_v28, %v1491_v28  ;;  %v679_v63 = vadd.f32 %v678_v51, %v1491_v28 }
 0x275   :  { %v716_v46 = vadd.f32 %v715_v59, %v701_v48 }
 0x27a   :  { %v1493_v37 = vpop.f32.mrf.mxu2 }
 0x27b   :  { %v702_v20 = vmul.f32 %v1493_v37, %v1493_v37  ;;  %v680_v44 = vadd.f32 %v679_v63, %v1493_v37 }
 0x27d   :  { %v717_v18 = vadd.f32 %v716_v46, %v702_v20 }
 0x282   :  { %v1495_v24 = vpop.f32.mrf.mxu2 }
 0x283   :  { %v703_v60 = vmul.f32 %v1495_v24, %v1495_v24  ;;  %v681_v19 = vadd.f32 %v680_v44, %v1495_v24 }
 0x285   :  { %v718_v58 = vadd.f32 %v717_v18, %v703_v60  ;;  %v710_v18 = vmul.f32 %v1501_v10, %v1501_v10 }
 0x28a   :  { %v1497_v25 = vpop.f32.mrf.mxu2 }
 0x28b   :  { %v704_v26 = vmul.f32 %v1497_v25, %v1497_v25  ;;  %v682_v4 = vadd.f32 %v681_v19, %v1497_v25 }
 0x28d   :  { %v719_v13 = vadd.f32 %v718_v58, %v704_v26  ;;  %v711_v58 = vmul.f32 %v1521_v21, %v1521_v21 }
 0x292   :  { %v1499_v3 = vpop.f32.mrf.mxu2 }
 0x293   :  { %v705_v6 = vmul.f32 %v1499_v3, %v1499_v3  ;;  %v683_v33 = vadd.f32 %v682_v4, %v1499_v3 }
 0x295   :  { %v720_v47 = vadd.f32 %v719_v13, %v705_v6  ;;  %v1557_v13 = vpop.f32.mrf.mxu3 }
 0x29a   :  { %v1503_v34 = vpop.f32.mrf.mxu2 }
 0x29b   :  { %v706_v32 = vmul.f32 %v1503_v34, %v1503_v34  ;;  %v684_v45 = vadd.f32 %v683_v33, %v1503_v34  ;;  %v712_v33 = vmul.f32 %v1540_v61, %v1540_v61 }
 0x29d   :  { %v721_v17 = vadd.f32 %v720_v47, %v706_v32 }
 0x2a2   :  { %v1516_v53 = vpop.f32.mrf.mxu2 }
 0x2a3   :  { %v707_v39 = vmul.f32 %v1516_v53, %v1516_v53  ;;  %v685_v51 = vadd.f32 %v684_v45, %v1516_v53  ;;  %v713_v45 = vmul.f32 %v1557_v13, %v1557_v13 }
 0x2a5   :  { %v722_v59 = vadd.f32 %v721_v17, %v707_v39 }
 0x2aa   :  { %v1532_v11 = vpop.f32.mrf.mxu2 }
 0x2ab   :  { %v708_v48 = vmul.f32 %v1532_v11, %v1532_v11  ;;  %v686_v63 = vadd.f32 %v685_v51, %v1532_v11 }
 0x2ad   :  { %v723_v46 = vadd.f32 %v722_v59, %v708_v48 }
 0x2b2   :  { %v1546_v20 = vpop.f32.mrf.mxu2 }
 0x2b3   :  { %v687_v44 = vadd.f32 %v686_v63, %v1546_v20  ;;  %v709_v60 = vmul.f32 %v1546_v20, %v1546_v20 }
 0x2b5   :  { %v688_v19 = vadd.f32 %v687_v44, %v1501_v10  ;;  %v724_v26 = vadd.f32 %v723_v46, %v709_v60 }
 0x2b7   :  { %v689_v4 = vadd.f32 %v688_v19, %v1521_v21  ;;  %v725_v6 = vadd.f32 %v724_v26, %v710_v18 }
 0x2b9   :  { %v690_v32 = vadd.f32 %v689_v4, %v1540_v61  ;;  %v726_v47 = vadd.f32 %v725_v6, %v711_v58 }
 0x2bb   :  { %v691_v39 = vadd.f32 %v690_v32, %v1557_v13  ;;  %v727_v17 = vadd.f32 %v726_v47, %v712_v33 }
 0x2bd   :  { %v692_v51 = vrot.slane %v691_v39, 4  ;;  %v728_v48 = vadd.f32 %v727_v17, %v713_v45 }
 0x2bf   :  { %v693_v59 = vadd.f32 %v692_v51, %v691_v39  ;;  %v729_v63 = vrot.slane %v728_v48, 4  ;;  %v675_v51 = vld [vmem:[%s1747_s7] sm:$0x1] }
 0x2c1   :  { %v694_v46 = vrot.slane %v693_v59, 2  ;;  %v730_v44 = vadd.f32 %v729_v63, %v728_v48 }
 0x2c3   :  { %v695_v60 = vadd.f32 %v694_v46, %v693_v59  ;;  %v731_v18 = vrot.slane %v730_v44, 2 }
 0x2c5   :  { %v696_v19 = vrot.slane %v695_v60, 1  ;;  %v732_v26 = vadd.f32 %v731_v18, %v730_v44 }
 0x2c7   :  { %v697_v56 = vadd.f32 %v696_v19, %v695_v60  ;;  %v733_v9 = vrot.slane %v732_v26, 1 }
 0x2c9   :  { %v734_v4 = vadd.f32 %v733_v9, %v732_v26  ;;  %v735_v58 = vmul.f32 0.0078125, %v697_v56 }
 0x2cb   :  { %v736_v6 = vmul.f32 0.0078125, %v734_v4  ;;  %v737_v15 = vmul.f32 %v735_v58, %v735_v58 }
 0x2cd   :  { %v738_v16 = vsub.f32 %v736_v6, %v737_v15 }
 0x2cf   :  { %v739_v1 = vmax.f32 %v738_v16, 0.0 }
 0x2d1   :  { %v740_v32 = vadd.f32 1e-05, %v739_v1  ;;  %v676_v1 = vld [vmem:[%s1748_s8] sm:$0x1] }
 0x2d3   :  { %1115 = vrsqrt.f32 %v740_v32  ;;  %vm747_vm4 = vweird.f32 %v740_v32 }
 0x2d9   :  { %v1116_v33 = vpop.eup %1115 }
 0x2da   :  { %v742_v47 = vmul.f32 %v1116_v33, %v740_v32  ;;  %vm748_vm3 = vweird.f32 %v1116_v33 }
 0x2db   :  { %vm749_vm5 = vmor %vm747_vm4, %vm748_vm3 }
 0x2dc   :  { %v743_v45 = vmul.f32 %v1116_v33, %v742_v47 }
 0x2de   :  { %v744_v39 = vmul.f32 0.5, %v743_v45 }
 0x2e0   :  { %v745_v17 = vsub.f32 1.5, %v744_v39 }
 0x2e2   :  { %v746_v48 = vmul.f32 %v1116_v33, %v745_v17 }
 0x2e4   :  { %v750_v56 = vsel %vm749_vm5, %v1116_v33, %v746_v48 }
 0x2e5   :  { %v751_v9 = vmul.f32 %v750_v56, %v675_v51 }
 0x2e7   :  { %v752_v15 = vmul.f32 %v751_v9, %v735_v58  ;;  %v1571_v16 = vperm.slane %v751_v9, 0  ;;  %v1760_v9 = vmax.f32 %v1353_v62, 0.0 }
 0x2e9   :  { %v753_v59 = vsub.f32 %v676_v1, %v752_v15  ;;  %v761_v46 = vmul.f32 %v1571_v16, %v1493_v37  ;;  %v759_v44 = vmul.f32 %v1571_v16, %v1489_v42  ;;  %v757_v60 = vmul.f32 %v1571_v16, %v1485_v22 }
 0x2ea   :  { %v762_v18 = vmul.f32 %v1571_v16, %v1495_v24  ;;  %v760_v58 = vmul.f32 %v1571_v16, %v1491_v28  ;;  %v758_v42 = vmul.f32 %v1571_v16, %v1487_v23  ;;  %v1596_v24 = vld [vmem:[%s1749_s9] ss:$0 sm:$0xff]  ;;  %v764_v52 = vmul.f32 %v1571_v16, %v1499_v3 }
 0x2eb   :  { %v1573_v63 = vperm.slane %v753_v59, 0  ;;  %v768_v15 = vmul.f32 %v1571_v16, %v1546_v20  ;;  %v767_v59 = vmul.f32 %v1571_v16, %v1532_v11  ;;  %v766_v5 = vmul.f32 %v1571_v16, %v1516_v53 }
 0x2ed   :  { %v780_v19 = vadd.f32 %v1573_v63, %v761_v46  ;;  %v778_v26 = vadd.f32 %v1573_v63, %v759_v44  ;;  %v776_v4 = vadd.f32 %v1573_v63, %v757_v60  ;;  %v781_v37 = vadd.f32 %v1573_v63, %v762_v18 }
 0x2ee   :  { %v779_v28 = vadd.f32 %v1573_v63, %v760_v58  ;;  %v777_v33 = vadd.f32 %v1573_v63, %v758_v42  ;;  %v787_v0 = vadd.f32 %v1573_v63, %v768_v15  ;;  %v786_v46 = vadd.f32 %v1573_v63, %v767_v59 }
 0x2ef   :  { %v796_v22 = vadd.f32 %v780_v19, %v288_v54  ;;  %v794_v6 = vadd.f32 %v778_v26, %v286_v40  ;;  %v792_v32 = vadd.f32 %v776_v4, %v284_v30  ;;  %v797_v49 = vadd.f32 %v781_v37, %v289_v55 }
 0x2f0   :  { %v795_v27 = vadd.f32 %v779_v28, %v287_v41  ;;  %v793_v30 = vadd.f32 %v777_v33, %v285_v31  ;;  %v765_v40 = vmul.f32 %v1571_v16, %v1503_v34  ;;  %v763_v55 = vmul.f32 %v1571_v16, %v1497_v25 }
 0x2f1   :  { %v812_v47 = vmax.f32 %v796_v22, 0.0  ;;  %v810_v23 = vmax.f32 %v794_v6, 0.0  ;;  %v808_v45 = vmax.f32 %v792_v32, 0.0  ;;  %v813_v17 = vmax.f32 %v797_v49, 0.0 }
 0x2f2   :  { %v811_v51 = vmax.f32 %v795_v27, 0.0  ;;  %v784_v38 = vadd.f32 %v1573_v63, %v765_v40  ;;  %v783_v41 = vadd.f32 %v1573_v63, %v764_v52  ;;  %v809_v29 = vmax.f32 %v793_v30, 0.0 }
 0x2f3   :  { %v832_v54 = vmul.f32 %v1596_v24, %v812_v47  ;;  %v830_v39 = vmul.f32 %v1596_v24, %v810_v23  ;;  %v828_v35 = vmul.f32 %v1596_v24, %v808_v45  ;;  %v782_v31 = vadd.f32 %v1573_v63, %v763_v55 }
 0x2f4   :  { %v833_v48 = vmul.f32 %v1596_v24, %v813_v17  ;;  %v831_v34 = vmul.f32 %v1596_v24, %v811_v51  ;;  %v800_v3 = vadd.f32 %v784_v38, %v292_v8  ;;  %v799_v56 = vadd.f32 %v783_v41, %v291_v2 }
 0x2f5   :  { %852 = vadd.xlane.f32.xlu2 %v832_v54  ;;  %848 = vadd.xlane.f32.xlu1 %v830_v39  ;;  %v829_v25 = vmul.f32 %v1596_v24, %v809_v29  ;;  %v798_v1 = vadd.f32 %v782_v31, %v1760_v9  ;;  %v785_v44 = vadd.f32 %v1573_v63, %v766_v5  ;;  %v1761_v18 = vmax.f32 %v1375_v14, 0.0 }
 0x2f6   :  { %844 = vadd.xlane.f32.xlu0 %v828_v35  ;;  %v816_v2 = vmax.f32 %v800_v3, 0.0  ;;  %v815_v8 = vmax.f32 %v799_v56, 0.0  ;;  %v1762_v19 = vmax.f32 %v1373_v12, 0.0  ;;  %v1763_v4 = vmax.f32 %v1365_v7, 0.0 }
 0x2f7   :  { %v814_v62 = vmax.f32 %v798_v1, 0.0  ;;  %v803_v11 = vadd.f32 %v787_v0, %v1761_v18  ;;  %v771_v37 = vmul.f32 %v1571_v16, %v1540_v61  ;;  %v770_v42 = vmul.f32 %v1571_v16, %v1521_v21 }
 0x2f8   :  { %v836_v20 = vmul.f32 %v1596_v24, %v816_v2  ;;  %v835_v60 = vmul.f32 %v1596_v24, %v815_v8  ;;  %v802_v26 = vadd.f32 %v786_v46, %v1762_v19  ;;  %v801_v58 = vadd.f32 %v785_v44, %v1763_v4 }
 0x2f9   :  { %v834_v53 = vmul.f32 %v1596_v24, %v814_v62  ;;  %v769_v14 = vmul.f32 %v1571_v16, %v1501_v10  ;;  %v819_v22 = vmax.f32 %v803_v11, 0.0  ;;  %v790_v6 = vadd.f32 %v1573_v63, %v771_v37 }
 0x2fa   :  { %v818_v12 = vmax.f32 %v802_v26, 0.0  ;;  %v789_v32 = vadd.f32 %v1573_v63, %v770_v42  ;;  %v817_v7 = vmax.f32 %v801_v58, 0.0  ;;  %v1764_v47 = vmax.f32 %v1335_v50, 0.0 }
 0x2fb   :  { %v788_v28 = vadd.f32 %v1573_v63, %v769_v14  ;;  %v839_v33 = vmul.f32 %v1596_v24, %v819_v22  ;;  %v1765_v23 = vmax.f32 %v1322_v43, 0.0  ;;  %v1766_v49 = vmax.f32 %v1315_v36, 0.0 }
 0x2fc   :  { %v838_v61 = vmul.f32 %v1596_v24, %v818_v12  ;;  %v806_v21 = vadd.f32 %v790_v6, %v1764_v47  ;;  %v837_v10 = vmul.f32 %v1596_v24, %v817_v7  ;;  %v772_v39 = vmul.f32 %v1571_v16, %v1557_v13  ;;  %v1112_v16 = vld [vmem:[#allocation2] ss:$0 sm:$0xff] }
 0x2fd   :  { %854 = vadd.xlane.f32.xlu2 %v833_v48  ;;  %850 = vadd.xlane.f32.xlu1 %v831_v34  ;;  %v805_v45 = vadd.f32 %v789_v32, %v1765_v23  ;;  %v804_v54 = vadd.f32 %v788_v28, %v1766_v49  ;;  %v1767_v36 = vmax.f32 %v1342_v57, 0.0 }
 0x2fe   :  { %846 = vadd.xlane.f32.xlu0 %v829_v25  ;;  %v822_v35 = vmax.f32 %v806_v21, 0.0  ;;  %v791_v50 = vadd.f32 %v1573_v63, %v772_v39 }
 0x2ff   :  { %v821_v27 = vmax.f32 %v805_v45, 0.0  ;;  %v820_v30 = vmax.f32 %v804_v54, 0.0 }
 0x300   :  { %v842_v40 = vmul.f32 %v1596_v24, %v822_v35  ;;  %v807_v55 = vadd.f32 %v791_v50, %v1767_v36 }
 0x301   :  { %v841_v43 = vmul.f32 %v1596_v24, %v821_v27  ;;  %v840_v52 = vmul.f32 %v1596_v24, %v820_v30 }
 0x302   :  { %v823_v17 = vmax.f32 %v807_v55, 0.0 }
 0x304   :  { %v843_v13 = vmul.f32 %v1596_v24, %v823_v17 }
 0x305   :  { %860 = vadd.xlane.f32.xlu2 %v836_v20  ;;  %858 = vadd.xlane.f32.xlu1 %v835_v60 }
 0x306   :  { %856 = vadd.xlane.f32.xlu0 %v834_v53 }
 0x30d   :  { %866 = vadd.xlane.f32.xlu2 %v839_v33  ;;  %864 = vadd.xlane.f32.xlu1 %v838_v61 }
 0x30e   :  { %862 = vadd.xlane.f32.xlu0 %v837_v10 }
 0x315   :  { %872 = vadd.xlane.f32.xlu2 %v842_v40  ;;  %870 = vadd.xlane.f32.xlu1 %v841_v43 }
 0x316   :  { %868 = vadd.xlane.f32.xlu0 %v840_v52 }
 0x31e   :  { %874 = vadd.xlane.f32.xlu0 %v843_v13 }
 0x368   :  { %v853_v51 = vpop.xlane.xlu2 %852  ;;  %v849_v63 = vpop.xlane.xlu1 %848 }
 0x369   :  { %v884_v38 = vadd.f32 %v1112_v16, %v853_v51  ;;  %v882_v41 = vadd.f32 %v1112_v16, %v849_v63  ;;  %v845_v29 = vpop.xlane.xlu0 %844 }
 0x36a   :  { %v880_v31 = vadd.f32 %v1112_v16, %v845_v29 }
 0x36b   :  { %901 = vst.msk [vmem:[%s1751_s11 + $0x20] sm:$0xff] %vm896_vm6, %v884_v38 }
 0x36c   :  { %899 = vst.msk [vmem:[%s1751_s11 + $0x10] sm:$0xff] %vm896_vm6, %v882_v41 }
 0x36d   :  { %897 = vst.msk [vmem:[%s1751_s11] sm:$0xff] %vm896_vm6, %v880_v31 }
 0x370   :  { %v855_v57 = vpop.xlane.xlu2 %854  ;;  %v851_v24 = vpop.xlane.xlu1 %850 }
 0x371   :  { %v885_v48 = vadd.f32 %v1112_v16, %v855_v57  ;;  %v883_v34 = vadd.f32 %v1112_v16, %v851_v24  ;;  %v847_v3 = vpop.xlane.xlu0 %846 }
 0x372   :  { %v881_v56 = vadd.f32 %v1112_v16, %v847_v3 }
 0x373   :  { %902 = vst.msk [vmem:[%s1751_s11 + $0x28] sm:$0xff] %vm896_vm6, %v885_v48 }
 0x374   :  { %900 = vst.msk [vmem:[%s1751_s11 + $0x18] sm:$0xff] %vm896_vm6, %v883_v34 }
 0x375   :  { %898 = vst.msk [vmem:[%s1751_s11 + $0x8] sm:$0xff] %vm896_vm6, %v881_v56 }
 0x378   :  { %v861_v25 = vpop.xlane.xlu2 %860  ;;  %v859_v9 = vpop.xlane.xlu1 %858 }
 0x379   :  { %v888_v1 = vadd.f32 %v1112_v16, %v861_v25  ;;  %v887_v15 = vadd.f32 %v1112_v16, %v859_v9  ;;  %v857_v59 = vpop.xlane.xlu0 %856 }
 0x37a   :  { %v886_v5 = vadd.f32 %v1112_v16, %v857_v59 }
 0x37b   :  { %905 = vst.msk [vmem:[%s1751_s11 + $0x40] sm:$0xff] %vm896_vm6, %v888_v1 }
 0x37c   :  { %904 = vst.msk [vmem:[%s1751_s11 + $0x38] sm:$0xff] %vm896_vm6, %v887_v15 }
 0x37d   :  { %903 = vst.msk [vmem:[%s1751_s11 + $0x30] sm:$0xff] %vm896_vm6, %v886_v5 }
 0x380   :  { %v867_v0 = vpop.xlane.xlu2 %866  ;;  %v865_v2 = vpop.xlane.xlu1 %864 }
 0x381   :  { %v891_v8 = vadd.f32 %v1112_v16, %v867_v0  ;;  %v890_v46 = vadd.f32 %v1112_v16, %v865_v2  ;;  %v863_v62 = vpop.xlane.xlu0 %862 }
 0x382   :  { %v889_v44 = vadd.f32 %v1112_v16, %v863_v62 }
 0x383   :  { %908 = vst.msk [vmem:[%s1751_s11 + $0x58] sm:$0xff] %vm896_vm6, %v891_v8 }
 0x384   :  { %907 = vst.msk [vmem:[%s1751_s11 + $0x50] sm:$0xff] %vm896_vm6, %v890_v46 }
 0x385   :  { %906 = vst.msk [vmem:[%s1751_s11 + $0x48] sm:$0xff] %vm896_vm6, %v889_v44 }
 0x388   :  { %v873_v20 = vpop.xlane.xlu2 %872  ;;  %v871_v60 = vpop.xlane.xlu1 %870 }
 0x389   :  { %v894_v18 = vadd.f32 %v1112_v16, %v873_v20  ;;  %v893_v11 = vadd.f32 %v1112_v16, %v871_v60  ;;  %v869_v19 = vpop.xlane.xlu0 %868 }
 0x38a   :  { %v892_v26 = vadd.f32 %v1112_v16, %v869_v19 }
 0x38b   :  { %911 = vst.msk [vmem:[%s1751_s11 + $0x70] sm:$0xff] %vm896_vm6, %v894_v18 }
 0x38c   :  { %910 = vst.msk [vmem:[%s1751_s11 + $0x68] sm:$0xff] %vm896_vm6, %v893_v11 }
 0x38d   :  { %909 = vst.msk [vmem:[%s1751_s11 + $0x60] sm:$0xff] %vm896_vm6, %v892_v26 }
 0x391   :  { %v875_v53 = vpop.xlane.xlu0 %874 }
 0x392   :  { %v895_v4 = vadd.f32 %v1112_v16, %v875_v53 }
 0x394   :  { %912 = vst.msk [vmem:[%s1751_s11 + $0x78] sm:$0xff] %vm896_vm6, %v895_v4 }
 0x395   :  { %917 = vsyncpa [#allocation4], 1 }
 0x396   :  { %918 = vsyncpa [#allocation6], 1 }
 0x397   :  { %919 = vsyncpa [#allocation9], 1 }

</bundles_post_ra>
